<compile_context>
chip_gen: v6e
topology: v6e:2x2x1
jax: 0.10.0
libtpu: 0.0.40
codegen_flags: <defaults>
</compile_context>

<pallas_src>
import functools

import jax
import jax.numpy as jnp
from jax.experimental import pallas as pl
from jax.experimental.pallas import tpu as pltpu


def _vmem_budget_bytes():
    """Conservative per-step VMEM budget (works on v5e/v6e/v7x)."""
    cap = 64 * 1024 * 1024
    try:  # trace-time hardware query; fall back to the smallest (v7x) capacity
        cap = getattr(pltpu.get_tpu_info(), "vmem_capacity_bytes", cap)
    except Exception:  # pragma: no cover - info query unavailable
        pass
    # Keep the double-buffered in+out working set well under the scoped limit.
    return cap // 8


def _pick_tile_m(M, S, St, itemsize):
    """Tile over the flattened B*C axis; multiple of 128 for lane-dense output."""
    # live bytes per m-row: (ctx_in + ctx_out + tgt_in + tgt_out), double-buffered
    per_row = 2 * (2 * S + St + 1) * itemsize
    t = (_vmem_budget_bytes() // max(per_row, 1)) // 128 * 128
    t = max(128, min(8192, t))
    if M <= t:
        return M  # full-extent block (always legal), grid of 1
    return t


def _tokenizer_kernel(inv_st, ctx_ref, tgt_ref, ctx_out_ref, tgt_out_ref):
    # ctx_ref: (tile_m, S)  -> ctx_out_ref: (S, tile_m)  (relu + in-kernel transpose)
    # tgt_ref: (tile_m, St) -> tgt_out_ref: (tile_m, 1)  (relu + f32 mean over lanes)
    ctx = jnp.maximum(ctx_ref[...], 0)
    ctx_out_ref[...] = jnp.transpose(ctx).astype(ctx_out_ref.dtype)

    tgt = jnp.maximum(tgt_ref[...].astype(jnp.float32), 0.0)
    tgt_out_ref[...] = (jnp.sum(tgt, axis=-1, keepdims=True) * inv_st).astype(
        tgt_out_ref.dtype
    )


def tokenizer_forward(context_encoding, target_encoding):
    """context_encoding: (B, C, Hc, Wc); target_encoding: (B, C, Ht, Wt).

    Returns:
      context_tokens: (Hc*Wc, B, C)
      target_tokens : (1, B, C)
    """
    B, C, Hc, Wc = context_encoding.shape
    Bt, Ct, Ht, Wt = target_encoding.shape
    assert B == Bt and C == Ct, "batch / channel mismatch between context and target"
    S = Hc * Wc
    St = Ht * Wt
    M = B * C

    # Free row-major views (no data movement).
    ctx2d = context_encoding.reshape(M, S)
    tgt2d = target_encoding.reshape(M, St)

    itemsize = jnp.dtype(context_encoding.dtype).itemsize
    tile_m = _pick_tile_m(M, S, St, itemsize)
    grid = (pl.cdiv(M, tile_m),)

    ctx_out2d, tgt_out2d = pl.pallas_call(
        functools.partial(_tokenizer_kernel, 1.0 / float(St)),
        grid=grid,
        in_specs=[
            pl.BlockSpec((tile_m, S), lambda i: (i, 0)),
            pl.BlockSpec((tile_m, St), lambda i: (i, 0)),
        ],
        out_specs=[
            pl.BlockSpec((S, tile_m), lambda i: (0, i)),
            pl.BlockSpec((tile_m, 1), lambda i: (i, 0)),
        ],
        out_shape=(
            jax.ShapeDtypeStruct((S, M), context_encoding.dtype),
            jax.ShapeDtypeStruct((M, 1), target_encoding.dtype),
        ),
        compiler_params=pltpu.CompilerParams(
            dimension_semantics=("parallel",),
        ),
    )(ctx2d, tgt2d)

    # Free row-major views back to the PyTorch output shapes.
    context_tokens = ctx_out2d.reshape(S, B, C)
    target_tokens = tgt_out2d.reshape(1, B, C)
    return context_tokens, target_tokens


if __name__ == "__main__":
    key = jax.random.PRNGKey(0)
    k1, k2 = jax.random.split(key)

    # Small shapes consistent with the module: 7x7 context -> 49 context tokens.
    B, C = 2, 32
    context_encoding = jax.random.normal(k1, (B, C, 7, 7), dtype=jnp.float32)
    target_encoding = jax.random.normal(k2, (B, C, 4, 4), dtype=jnp.float32)

    ctx_tok, tgt_tok = jax.jit(tokenizer_forward)(context_encoding, target_encoding)
    jax.block_until_ready((ctx_tok, tgt_tok))

    # Pure-JAX reference for the PyTorch forward.
    ctx_ref = jnp.transpose(
        jnp.maximum(context_encoding, 0.0).reshape(B, C, 49), (2, 0, 1)
    )
    tgt_ref = jnp.mean(jnp.maximum(target_encoding, 0.0), axis=(2, 3))[None]

    assert ctx_tok.shape == (49, B, C), ctx_tok.shape
    assert tgt_tok.shape == (1, B, C), tgt_tok.shape
    assert jnp.allclose(ctx_tok, ctx_ref, atol=1e-6), "context tokens mismatch"
    assert jnp.allclose(tgt_tok, tgt_ref, atol=1e-6), "target tokens mismatch"

    print("KERNEL_OK")
</pallas_src>

<mosaic_0001>
module attributes {stable_mosaic.version = 11 : i64} {
  func.func @_tokenizer_kernel(%arg0: i32, %arg1: memref<64x49xf32, #tpu.memory_space<vmem>>, %arg2: memref<64x16xf32, #tpu.memory_space<vmem>>, %arg3: memref<49x64xf32, #tpu.memory_space<vmem>>, %arg4: memref<64x1xf32, #tpu.memory_space<vmem>>) attributes {dimension_semantics = [#tpu.dimension_semantics<parallel>], iteration_bounds = array<i64: 1>, scalar_prefetch = 0 : i64, scratch_operands = 0 : i64, tpu.core_type = #tpu.core_type<tc>, window_params = [{transform_indices = @transform_0, window_bounds = array<i64: 64, 49>}, {transform_indices = @transform_1, window_bounds = array<i64: 64, 16>}, {transform_indices = @transform_2, window_bounds = array<i64: 49, 64>}, {transform_indices = @transform_3, window_bounds = array<i64: 64, 1>}]} {
    %c0 = arith.constant 0 : index
    %c0_0 = arith.constant 0 : index
    %0 = vector.load %arg1[%c0, %c0_0] : memref<64x49xf32, #tpu.memory_space<vmem>>, vector<64x49xf32>
    %cst = arith.constant 0.000000e+00 : f32
    %1 = vector.broadcast %cst : f32 to vector<64x49xf32>
    %2 = arith.maximumf %0, %1 : vector<64x49xf32>
    %3 = tpu.transpose %2, [1, 0] : vector<64x49xf32> -> vector<49x64xf32>
    %c0_1 = arith.constant 0 : index
    %c0_2 = arith.constant 0 : index
    %4 = vector.load %arg3[%c0_1, %c0_2] : memref<49x64xf32, #tpu.memory_space<vmem>>, vector<49x64xf32>
    tpu.vector_store %arg3[%c0_1, %c0_2], %3 {strides = array<i32>} : memref<49x64xf32, #tpu.memory_space<vmem>>, vector<49x64xf32>,
    %c0_3 = arith.constant 0 : index
    %c0_4 = arith.constant 0 : index
    %5 = vector.load %arg2[%c0_3, %c0_4] : memref<64x16xf32, #tpu.memory_space<vmem>>, vector<64x16xf32>
    %cst_5 = arith.constant 0.000000e+00 : f32
    %6 = vector.broadcast %cst_5 : f32 to vector<64x16xf32>
    %7 = arith.maximumf %5, %6 : vector<64x16xf32>
    %cst_6 = arith.constant dense<0.000000e+00> : vector<64xf32>
    %8 = vector.multi_reduction <add>, %7, %cst_6 [1] : vector<64x16xf32> to vector<64xf32>
    %9 = vector.shape_cast %8 : vector<64xf32> to vector<64x1xf32>
    %cst_7 = arith.constant 6.250000e-02 : f32
    %10 = vector.broadcast %cst_7 : f32 to vector<64x1xf32>
    %11 = arith.mulf %9, %10 : vector<64x1xf32>
    %c0_8 = arith.constant 0 : index
    %c0_9 = arith.constant 0 : index
    %12 = vector.load %arg4[%c0_8, %c0_9] : memref<64x1xf32, #tpu.memory_space<vmem>>, vector<64x1xf32>
    tpu.vector_store %arg4[%c0_8, %c0_9], %11 {strides = array<i32>} : memref<64x1xf32, #tpu.memory_space<vmem>>, vector<64x1xf32>,
    return
  }
  func.func @transform_0(%arg0: i32) -> (i32, i32) {
    %c0_i32 = arith.constant 0 : i32
    %c0_i32_0 = arith.constant 0 : i32
    return %arg0, %c0_i32 : i32, i32
  }
  func.func @transform_1(%arg0: i32) -> (i32, i32) {
    %c0_i32 = arith.constant 0 : i32
    %c0_i32_0 = arith.constant 0 : i32
    return %arg0, %c0_i32 : i32, i32
  }
  func.func @transform_2(%arg0: i32) -> (i32, i32) {
    %c0_i32 = arith.constant 0 : i32
    %c0_i32_0 = arith.constant 0 : i32
    return %c0_i32, %arg0 : i32, i32
  }
  func.func @transform_3(%arg0: i32) -> (i32, i32) {
    %c0_i32 = arith.constant 0 : i32
    %c0_i32_0 = arith.constant 0 : i32
    return %arg0, %c0_i32 : i32, i32
  }
}

</mosaic_0001>

<bundles_post_ra>
// kernel: tokenizer_forward.1
= control target key start
LH: loop header
LB: loop body
LE: loop exit
PB: predicated region body
PF: predicated region fallthrough
CT: control target
= control target key end

     0   :  { %vm86_vm0 = vcmask 130048   ;;  %vm119_vm1 = vcmask 7168   ;;  %vm61_vm2 = vcmask 523264   ;;  %vm68_vm3 = vcmask 516096   ;;  %s266_s1 = inlined_call_operand.vmem [shape: f32[64,16], index: 1, kind: input, shape index: {}]   ;;  %s267_s0 = inlined_call_operand.vmem [shape: f32[64,49], index: 0, kind: input, shape index: {}]   ;;  %s268_s3 = inlined_call_operand.vmem [shape: f32[64,1], index: 3, kind: output, shape index: {1}]   ;;  %s269_s2 = inlined_call_operand.vmem [shape: f32[49,64], index: 2, kind: output, shape index: {0}]  }
   0x1   :  { %v70_v0 = vld [vmem:[%s266_s1] sm:$0xff]  ;;  %v71_v1 = vld [vmem:[%s266_s1 + $0x8] sm:$0xff]  ;;  %v72_v4 = vld [vmem:[%s266_s1 + $0x10] sm:$0xff] }
   0x2   :  { %v78_v2 = vmax.f32 %v70_v0, 0.0  ;;  %v79_v3 = vmax.f32 %v71_v1, 0.0  ;;  %v74_v5 = vld [vmem:[%s266_s1 + $0x20] sm:$0xff]  ;;  %v80_v6 = vmax.f32 %v72_v4, 0.0  ;;  %v73_v7 = vld [vmem:[%s266_s1 + $0x18] sm:$0xff]  ;;  %v75_v10 = vld [vmem:[%s266_s1 + $0x28] sm:$0xff] }
   0x3   :  { %v81_v9 = vmax.f32 %v73_v7, 0.0  ;;  %v82_v13 = vmax.f32 %v74_v5, 0.0  ;;  %v76_v14 = vld [vmem:[%s266_s1 + $0x30] sm:$0xff]  ;;  %v83_v16 = vmax.f32 %v75_v10, 0.0  ;;  %v77_v17 = vld [vmem:[%s266_s1 + $0x38] sm:$0xff]  ;;  %v13_v24 = vld [vmem:[%s267_s0] sm:$0xff] }
   0x4   :  { %v87_v8 = vsel %vm86_vm0, %v78_v2, 0.0  ;;  %v93_v11 = vsel %vm86_vm0, %v80_v6, 0.0  ;;  %v90_v12 = vsel %vm86_vm0, %v79_v3, 0.0  ;;  %v84_v19 = vmax.f32 %v76_v14, 0.0  ;;  %v14_v26 = vld [vmem:[%s267_s0 + $0x8] sm:$0xff]  ;;  %v15_v28 = vld [vmem:[%s267_s0 + $0x10] sm:$0xff] }
   0x5   :  { %88 = vadd.xlane.f32.xlu0 %v87_v8  ;;  %94 = vadd.xlane.f32.xlu1 %v93_v11  ;;  %v96_v15 = vsel %vm86_vm0, %v81_v9, 0.0  ;;  %v99_v18 = vsel %vm86_vm0, %v82_v13, 0.0  ;;  %v102_v20 = vsel %vm86_vm0, %v83_v16, 0.0  ;;  %v85_v21 = vmax.f32 %v77_v17, 0.0  ;;  %v16_v30 = vld [vmem:[%s267_s0 + $0x18] sm:$0xff]  ;;  %v17_v32 = vld [vmem:[%s267_s0 + $0x20] sm:$0xff] }
   0x6   :  { %v105_v22 = vsel %vm86_vm0, %v84_v19, 0.0  ;;  %v21_v25 = vmax.f32 %v13_v24, 0.0  ;;  %v22_v27 = vmax.f32 %v14_v26, 0.0  ;;  %v23_v29 = vmax.f32 %v15_v28, 0.0  ;;  %v18_v34 = vld [vmem:[%s267_s0 + $0x28] sm:$0xff]  ;;  %v19_v36 = vld [vmem:[%s267_s0 + $0x30] sm:$0xff] }
   0x7   :  { %v108_v23 = vsel %vm86_vm0, %v85_v21, 0.0  ;;  %v24_v31 = vmax.f32 %v16_v30, 0.0  ;;  %v25_v33 = vmax.f32 %v17_v32, 0.0  ;;  %v26_v35 = vmax.f32 %v18_v34, 0.0  ;;  %v20_v38 = vld [vmem:[%s267_s0 + $0x38] sm:$0xff] }
   0x8   :  { %v27_v37 = vmax.f32 %v19_v36, 0.0  ;;  %v28_v39 = vmax.f32 %v20_v38, 0.0 }
   0x9   :  { %91 = vadd.xlane.f32.xlu0 %v90_v12  ;;  %97 = vadd.xlane.f32.xlu1 %v96_v15 }
   0xd   :  { %100 = vadd.xlane.f32.xlu0 %v99_v18  ;;  %103 = vadd.xlane.f32.xlu1 %v102_v20 }
  0x11   :  { %106 = vadd.xlane.f32.xlu0 %v105_v22  ;;  %109 = vadd.xlane.f32.xlu1 %v108_v23 }
  0x3e   :  { %29 = vxpose.xlu0.b32.start [1/8] (short) (narrow) %v21_v25, 56 }
  0x42   :  { %30 = vxpose.xlu0.b32.cont [2/8] (short) (narrow) %v22_v27, 56 }
  0x46   :  { %31 = vxpose.xlu0.b32.cont [3/8] (short) (narrow) %v23_v29, 56 }
  0x4a   :  { %32 = vxpose.xlu0.b32.cont [4/8] (short) (narrow) %v24_v31, 56 }
  0x4e   :  { %33 = vxpose.xlu0.b32.cont [5/8] (short) (narrow) %v25_v33, 56 }
  0x52   :  { %34 = vxpose.xlu0.b32.cont [6/8] (short) (narrow) %v26_v35, 56 }
  0x56   :  { %35 = vxpose.xlu0.b32.cont [7/8] (short) (narrow) %v27_v37, 56 }
  0x5a   :  { %36 = vxpose.xlu0.b32.end [8/8] (short) (narrow) %v28_v39, 56 }
  0x8e   :  { %v89_v40 = vpop.xlane.xlu0 %88  ;;  %v95_v42 = vpop.xlane.xlu1 %94 }
  0x8f   :  { %v111_v41 = vmul.f32 0.0625, %v89_v40  ;;  %v113_v43 = vmul.f32 0.0625, %v95_v42 }
  0x91   :  { %120 = vst.msk [vmem:[%s268_s3] sm:$0xff] %vm119_vm1, %v111_v41  ;;  %122 = vst.msk [vmem:[%s268_s3 + $0x10] sm:$0xff] %vm119_vm1, %v113_v43 }
  0x92   :  { %v92_v44 = vpop.xlane.xlu0 %91  ;;  %v98_v46 = vpop.xlane.xlu1 %97 }
  0x93   :  { %v112_v45 = vmul.f32 0.0625, %v92_v44  ;;  %v114_v47 = vmul.f32 0.0625, %v98_v46 }
  0x95   :  { %121 = vst.msk [vmem:[%s268_s3 + $0x8] sm:$0xff] %vm119_vm1, %v112_v45  ;;  %123 = vst.msk [vmem:[%s268_s3 + $0x18] sm:$0xff] %vm119_vm1, %v114_v47 }
  0x96   :  { %v101_v48 = vpop.xlane.xlu0 %100  ;;  %v104_v50 = vpop.xlane.xlu1 %103 }
  0x97   :  { %v115_v49 = vmul.f32 0.0625, %v101_v48  ;;  %v116_v51 = vmul.f32 0.0625, %v104_v50 }
  0x99   :  { %124 = vst.msk [vmem:[%s268_s3 + $0x20] sm:$0xff] %vm119_vm1, %v115_v49  ;;  %125 = vst.msk [vmem:[%s268_s3 + $0x28] sm:$0xff] %vm119_vm1, %v116_v51 }
  0x9a   :  { %v107_v52 = vpop.xlane.xlu0 %106  ;;  %v110_v54 = vpop.xlane.xlu1 %109 }
  0x9b   :  { %v117_v53 = vmul.f32 0.0625, %v107_v52  ;;  %v118_v55 = vmul.f32 0.0625, %v110_v54 }
  0x9d   :  { %126 = vst.msk [vmem:[%s268_s3 + $0x30] sm:$0xff] %vm119_vm1, %v117_v53  ;;  %127 = vst.msk [vmem:[%s268_s3 + $0x38] sm:$0xff] %vm119_vm1, %v118_v55 }
  0xba   :  { %v45_v56 = vpop.trf.xlu0 }
  0xbb   :  { %62 = vst.msk [vmem:[%s269_s2] sm:$0xff] %vm61_vm2, %v45_v56 }
  0xbe   :  { %v46_v57 = vpop.trf.xlu0 }
  0xbf   :  { %63 = vst.msk [vmem:[%s269_s2 + $0x8] sm:$0xff] %vm61_vm2, %v46_v57 }
  0xc2   :  { %v47_v58 = vpop.trf.xlu0 }
  0xc3   :  { %64 = vst.msk [vmem:[%s269_s2 + $0x10] sm:$0xff] %vm61_vm2, %v47_v58 }
  0xc6   :  { %v48_v59 = vpop.trf.xlu0 }
  0xc7   :  { %65 = vst.msk [vmem:[%s269_s2 + $0x18] sm:$0xff] %vm61_vm2, %v48_v59 }
  0xca   :  { %v49_v60 = vpop.trf.xlu0 }
  0xcb   :  { %66 = vst.msk [vmem:[%s269_s2 + $0x20] sm:$0xff] %vm61_vm2, %v49_v60 }
  0xce   :  { %v50_v61 = vpop.trf.xlu0 }
  0xcf   :  { %67 = vst.msk [vmem:[%s269_s2 + $0x28] sm:$0xff] %vm61_vm2, %v50_v61 }
  0xd2   :  { %v51_v62 = vpop.trf.xlu0 }
  0xd3   :  { %69 = vst.msk [vmem:[%s269_s2 + $0x30] sm:$0x1] %vm68_vm3, %v51_v62 }

</bundles_post_ra>
